<compile_context>
chip_gen: v7x
topology: tpu7x:2x2x1
jax: 0.10.0
libtpu: 0.0.40
codegen_flags: <defaults>
</compile_context>

<pallas_src>
from functools import partial

import jax
import jax.numpy as jnp
from jax import lax
from jax.experimental import pallas as pl
from jax.experimental.pallas import tpu as pltpu

CLASSNUM = 10
BN_EPS = 1e-3


def _round_up(v, m):
    return ((v + m - 1) // m) * m


def _pair(v):
    return (v, v) if isinstance(v, int) else tuple(v)


# ---------------------------------------------------------------------------
# Pallas kernel: one (tm, Kp) x (Kp, tn) bf16 matmul block with fused
# per-output-channel scale/bias (+ReLU).  Full K per block -> no accumulator.
# ---------------------------------------------------------------------------

def _mm_kernel(a_ref, w_ref, s_ref, b_ref, o_ref, *, relu):
    y = jnp.dot(a_ref[...], w_ref[...], preferred_element_type=jnp.float32)
    y = y * s_ref[...] + b_ref[...]
    if relu:
        y = jnp.maximum(y, 0.0)
    o_ref[...] = y.astype(o_ref.dtype)


def _choose_tn(Np, m_blocks):
    cands = [c for c in (512, 384, 256, 128) if Np % c == 0]
    if m_blocks >= 2:
        return cands[0]
    for c in cands:                      # expose >=2 parallel blocks (v7x dual TC)
        if Np // c >= 2:
            return c
    return cands[-1]


@partial(jax.jit, static_argnames=("kh", "kw", "sh", "sw", "ph", "pw",
                                   "n_out", "relu", "out_dtype"))
def _conv_bn_act(x, w, scale, bias, *, kh, kw, sh, sw, ph, pw, n_out, relu,
                 out_dtype):
    """x: (N, H, W, Cin).  w: (Kp, Np) bf16 pre-padded.  Returns (N, Ho, Wo, n_out)."""
    n, h, wid, c = x.shape
    Kp, Np = w.shape

    # im2col (emitted directly at padded K via a trailing zero block)
    if ph or pw:
        x = jnp.pad(x, ((0, 0), (ph, ph), (pw, pw), (0, 0)))
    hp, wp = h + 2 * ph, wid + 2 * pw
    ho = (hp - kh) // sh + 1
    wo = (wp - kw) // sw + 1
    cols = [x[:, i:i + (ho - 1) * sh + 1:sh, j:j + (wo - 1) * sw + 1:sw, :]
            for i in range(kh) for j in range(kw)]
    K = kh * kw * c
    if Kp > K:
        cols.append(jnp.zeros((n, ho, wo, Kp - K), x.dtype))
    a = cols[0] if len(cols) == 1 else jnp.concatenate(cols, axis=-1)

    M = n * ho * wo
    a = a.reshape(M, Kp).astype(jnp.bfloat16)
    Mp = max(128, _round_up(M, 128))
    if Mp > M:
        a = jnp.pad(a, ((0, Mp - M), (0, 0)))

    tm = 128
    tn = _choose_tn(Np, Mp // tm)

    out = pl.pallas_call(
        partial(_mm_kernel, relu=relu),
        out_shape=jax.ShapeDtypeStruct((Mp, Np), out_dtype),
        grid_spec=pltpu.PrefetchScalarGridSpec(
            num_scalar_prefetch=0,
            grid=(Mp // tm, Np // tn),
            in_specs=[
                pl.BlockSpec((tm, Kp), lambda i, j: (i, 0)),
                pl.BlockSpec((Kp, tn), lambda i, j: (0, j)),
                pl.BlockSpec((1, tn), lambda i, j: (0, j)),
                pl.BlockSpec((1, tn), lambda i, j: (0, j)),
            ],
            out_specs=pl.BlockSpec((tm, tn), lambda i, j: (i, j)),
        ),
        compiler_params=pltpu.CompilerParams(
            dimension_semantics=("parallel", "parallel"),
            vmem_limit_bytes=32 * 1024 * 1024),
    )(a, w, scale, bias)

    out = out[:M, :n_out]
    return out.reshape(n, ho, wo, n_out)


def basic_conv(p, x, relu=True, out_dtype=jnp.bfloat16):
    """conv (no bias) + folded BatchNorm (eval) + ReLU, fused in the Pallas matmul."""
    return _conv_bn_act(x, p["w"], p["scale"], p["bias"],
                        kh=p["kh"], kw=p["kw"], sh=p["sh"], sw=p["sw"],
                        ph=p["ph"], pw=p["pw"], n_out=p["cout"],
                        relu=relu, out_dtype=out_dtype)


def conv_split(p, x):
    """Fused 1x1-branch conv: one wide matmul, then split along channels."""
    y = basic_conv(p, x)
    outs, off = [], 0
    for c in p["splits"]:
        outs.append(y[..., off:off + c])
        off += c
    return outs


# ---------------------------------------------------------------------------
# Pooling helpers (kept as lax.reduce_window glue)
# TODO(synk): pooling has no dedicated Pallas kernel; conv/matmul hot path is Pallas.
# ---------------------------------------------------------------------------

def max_pool(x, k, s):
    return lax.reduce_window(x, jnp.asarray(-jnp.inf, x.dtype), lax.max,
                             (1, k, k, 1), (1, s, s, 1), "VALID")


def avg_pool3(x):
    # F.avg_pool2d(x, 3, stride=1, padding=1), count_include_pad=True
    s = lax.reduce_window(x, jnp.asarray(0, x.dtype), lax.add, (1, 3, 3, 1),
                          (1, 1, 1, 1), ((0, 0), (1, 1), (1, 1), (0, 0)))
    return s / 9.0


# ---------------------------------------------------------------------------
# Deterministic synthetic parameters (shapes match torchvision inception_v3)
# ---------------------------------------------------------------------------

class _PG:
    def __init__(self, key):
        self.key = key
        self.i = 0

    def __call__(self):
        self.i += 1
        return jax.random.fold_in(self.key, self.i)


def mk_conv_raw(pg, cin, cout, kernel, stride=1, padding=0):
    kh, kw = _pair(kernel)
    sh, sw = _pair(stride)
    ph, pw = _pair(padding)
    fan_in = kh * kw * cin
    w = jax.random.normal(pg(), (kh, kw, cin, cout), jnp.float32) * (2.0 / fan_in) ** 0.5
    gamma = 1.0 + 0.05 * jax.random.normal(pg(), (cout,), jnp.float32)
    beta = 0.05 * jax.random.normal(pg(), (cout,), jnp.float32)
    rmean = 0.05 * jax.random.normal(pg(), (cout,), jnp.float32)
    rvar = 1.0 + 0.05 * jnp.abs(jax.random.normal(pg(), (cout,), jnp.float32))
    scale = gamma / jnp.sqrt(rvar + BN_EPS)       # BN folded (eval mode)
    bias = beta - rmean * scale
    return dict(w=w.reshape(kh * kw * cin, cout), scale=scale, bias=bias,
                kh=kh, kw=kw, sh=sh, sw=sw, ph=ph, pw=pw, cout=cout)


def _prep(c):
    """Pad K/N to multiples of 128 and pre-cast the weight to bf16 (done once)."""
    K, N = c["w"].shape
    Kp, Np = _round_up(K, 128), _round_up(N, 128)
    w = jnp.pad(c["w"], ((0, Kp - K), (0, Np - N))).astype(jnp.bfloat16)
    scale = jnp.pad(c["scale"], (0, Np - N)).reshape(1, Np).astype(jnp.float32)
    bias = jnp.pad(c["bias"], (0, Np - N)).reshape(1, Np).astype(jnp.float32)
    out = {k: v for k, v in c.items() if k not in ("w", "scale", "bias")}
    out.update(w=w, scale=scale, bias=bias)
    return out


def mk_conv(pg, cin, cout, kernel, stride=1, padding=0):
    return _prep(mk_conv_raw(pg, cin, cout, kernel, stride, padding))


def fuse_1x1(convs):
    """Concatenate several 1x1 convs (same input) into one wide matmul."""
    for c in convs:
        assert c["kh"] == 1 and c["kw"] == 1 and c["sh"] == 1 and c["ph"] == 0
    fused = dict(w=jnp.concatenate([c["w"] for c in convs], axis=1),
                 scale=jnp.concatenate([c["scale"] for c in convs]),
                 bias=jnp.concatenate([c["bias"] for c in convs]),
                 kh=1, kw=1, sh=1, sw=1, ph=0, pw=0,
                 cout=sum(c["cout"] for c in convs))
    p = _prep(fused)
    p["splits"] = tuple(c["cout"] for c in convs)
    return p


def mk_fc(pg, cin, cout):
    w = jax.random.normal(pg(), (cin, cout), jnp.float32) * (1.0 / cin) ** 0.5
    b = 0.01 * jax.random.normal(pg(), (cout,), jnp.float32)
    return _prep(dict(w=w, scale=jnp.ones((cout,), jnp.float32), bias=b,
                      kh=1, kw=1, sh=1, sw=1, ph=0, pw=0, cout=cout))


def mk_inception_a(pg, cin, pool_features):
    b1 = mk_conv_raw(pg, cin, 64, 1)
    b5_1 = mk_conv_raw(pg, cin, 48, 1)
    b5_2 = mk_conv_raw(pg, 48, 64, 5, padding=2)
    b3_1 = mk_conv_raw(pg, cin, 64, 1)
    b3_2 = mk_conv_raw(pg, 64, 96, 3, padding=1)
    b3_3 = mk_conv_raw(pg, 96, 96, 3, padding=1)
    bp = mk_conv_raw(pg, cin, pool_features, 1)
    return dict(head=fuse_1x1([b1, b5_1, b3_1]),
                b5_2=_prep(b5_2), b3_2=_prep(b3_2), b3_3=_prep(b3_3),
                bp=_prep(bp))


def mk_inception_b(pg, cin):
    return dict(
        b3=mk_conv(pg, cin, 384, 3, stride=2),
        b3d_1=mk_conv(pg, cin, 64, 1), b3d_2=mk_conv(pg, 64, 96, 3, padding=1),
        b3d_3=mk_conv(pg, 96, 96, 3, stride=2))


def mk_inception_c(pg, cin, c7):
    b1 = mk_conv_raw(pg, cin, 192, 1)
    b7_1 = mk_conv_raw(pg, cin, c7, 1)
    b7_2 = mk_conv_raw(pg, c7, c7, (1, 7), padding=(0, 3))
    b7_3 = mk_conv_raw(pg, c7, 192, (7, 1), padding=(3, 0))
    b7d_1 = mk_conv_raw(pg, cin, c7, 1)
    b7d_2 = mk_conv_raw(pg, c7, c7, (7, 1), padding=(3, 0))
    b7d_3 = mk_conv_raw(pg, c7, c7, (1, 7), padding=(0, 3))
    b7d_4 = mk_conv_raw(pg, c7, c7, (7, 1), padding=(3, 0))
    b7d_5 = mk_conv_raw(pg, c7, 192, (1, 7), padding=(0, 3))
    bp = mk_conv_raw(pg, cin, 192, 1)
    return dict(head=fuse_1x1([b1, b7_1, b7d_1]),
                b7_2=_prep(b7_2), b7_3=_prep(b7_3),
                b7d_2=_prep(b7d_2), b7d_3=_prep(b7d_3),
                b7d_4=_prep(b7d_4), b7d_5=_prep(b7d_5), bp=_prep(bp))


def mk_inception_d(pg, cin):
    b3_1 = mk_conv_raw(pg, cin, 192, 1)
    b3_2 = mk_conv_raw(pg, 192, 320, 3, stride=2)
    b7_1 = mk_conv_raw(pg, cin, 192, 1)
    b7_2 = mk_conv_raw(pg, 192, 192, (1, 7), padding=(0, 3))
    b7_3 = mk_conv_raw(pg, 192, 192, (7, 1), padding=(3, 0))
    b7_4 = mk_conv_raw(pg, 192, 192, 3, stride=2)
    return dict(head=fuse_1x1([b3_1, b7_1]),
                b3_2=_prep(b3_2), b7_2=_prep(b7_2), b7_3=_prep(b7_3),
                b7_4=_prep(b7_4))


def mk_inception_e(pg, cin):
    b1 = mk_conv_raw(pg, cin, 320, 1)
    b3_1 = mk_conv_raw(pg, cin, 384, 1)
    b3_2a = mk_conv_raw(pg, 384, 384, (1, 3), padding=(0, 1))
    b3_2b = mk_conv_raw(pg, 384, 384, (3, 1), padding=(1, 0))
    b3d_1 = mk_conv_raw(pg, cin, 448, 1)
    b3d_2 = mk_conv_raw(pg, 448, 384, 3, padding=1)
    b3d_3a = mk_conv_raw(pg, 384, 384, (1, 3), padding=(0, 1))
    b3d_3b = mk_conv_raw(pg, 384, 384, (3, 1), padding=(1, 0))
    bp = mk_conv_raw(pg, cin, 192, 1)
    return dict(head=fuse_1x1([b1, b3_1, b3d_1]),
                b3_2a=_prep(b3_2a), b3_2b=_prep(b3_2b),
                b3d_2=_prep(b3d_2), b3d_3a=_prep(b3d_3a), b3d_3b=_prep(b3d_3b),
                bp=_prep(bp))


def build_params(key, num_classes):
    pg = _PG(key)
    P = {}
    P["Conv2d_1a_3x3"] = mk_conv(pg, 3, 32, 3, stride=2)
    P["Conv2d_2a_3x3"] = mk_conv(pg, 32, 32, 3)
    P["Conv2d_2b_3x3"] = mk_conv(pg, 32, 64, 3, padding=1)
    P["Conv2d_3b_1x1"] = mk_conv(pg, 64, 80, 1)
    P["Conv2d_4a_3x3"] = mk_conv(pg, 80, 192, 3)
    P["Mixed_5b"] = mk_inception_a(pg, 192, 32)
    P["Mixed_5c"] = mk_inception_a(pg, 256, 64)
    P["Mixed_5d"] = mk_inception_a(pg, 288, 64)
    P["Mixed_6a"] = mk_inception_b(pg, 288)
    P["Mixed_6b"] = mk_inception_c(pg, 768, 128)
    P["Mixed_6c"] = mk_inception_c(pg, 768, 160)
    P["Mixed_6d"] = mk_inception_c(pg, 768, 160)
    P["Mixed_6e"] = mk_inception_c(pg, 768, 192)
    # TODO(synk): InceptionAux (AuxLogits) params omitted — training-mode only.
    P["Mixed_7a"] = mk_inception_d(pg, 768)
    P["Mixed_7b"] = mk_inception_e(pg, 1280)
    P["Mixed_7c"] = mk_inception_e(pg, 2048)
    P["fc"] = mk_fc(pg, 2048, num_classes)
    return P


# ---------------------------------------------------------------------------
# Inception blocks (forward)
# ---------------------------------------------------------------------------

def inception_a_fwd(p, x):
    b1, b5, b3 = conv_split(p["head"], x)          # fused 1x1 branches
    b5 = basic_conv(p["b5_2"], b5)
    b3 = basic_conv(p["b3_3"], basic_conv(p["b3_2"], b3))
    bp = basic_conv(p["bp"], avg_pool3(x))
    return jnp.concatenate([b1, b5, b3, bp], axis=-1)


def inception_b_fwd(p, x):
    b3 = basic_conv(p["b3"], x)
    b3d = basic_conv(p["b3d_3"], basic_conv(p["b3d_2"], basic_conv(p["b3d_1"], x)))
    bp = max_pool(x, 3, 2)
    return jnp.concatenate([b3, b3d, bp], axis=-1)


def inception_c_fwd(p, x):
    b1, b7, b7d = conv_split(p["head"], x)
    b7 = basic_conv(p["b7_3"], basic_conv(p["b7_2"], b7))
    for k in ("b7d_2", "b7d_3", "b7d_4", "b7d_5"):
        b7d = basic_conv(p[k], b7d)
    bp = basic_conv(p["bp"], avg_pool3(x))
    return jnp.concatenate([b1, b7, b7d, bp], axis=-1)


def inception_d_fwd(p, x):
    b3, b7 = conv_split(p["head"], x)
    b3 = basic_conv(p["b3_2"], b3)
    for k in ("b7_2", "b7_3", "b7_4"):
        b7 = basic_conv(p[k], b7)
    bp = max_pool(x, 3, 2)
    return jnp.concatenate([b3, b7, bp], axis=-1)


def inception_e_fwd(p, x):
    b1, b3, b3d = conv_split(p["head"], x)
    b3 = jnp.concatenate([basic_conv(p["b3_2a"], b3),
                          basic_conv(p["b3_2b"], b3)], axis=-1)
    b3d = basic_conv(p["b3d_2"], b3d)
    b3d = jnp.concatenate([basic_conv(p["b3d_3a"], b3d),
                           basic_conv(p["b3d_3b"], b3d)], axis=-1)
    bp = basic_conv(p["bp"], avg_pool3(x))
    return jnp.concatenate([b1, b3, b3d, bp], axis=-1)


# ---------------------------------------------------------------------------
# Full forward (eval-mode inception_v3 with transform_input=True)
# ---------------------------------------------------------------------------

def googlenet_forward(params, x_nchw):
    x = x_nchw.astype(jnp.float32)
    # transform_input (torchvision, pretrained=True default)
    ch0 = x[:, 0:1] * (0.229 / 0.5) + (0.485 - 0.5) / 0.5
    ch1 = x[:, 1:2] * (0.224 / 0.5) + (0.456 - 0.5) / 0.5
    ch2 = x[:, 2:3] * (0.225 / 0.5) + (0.406 - 0.5) / 0.5
    x = jnp.concatenate([ch0, ch1, ch2], axis=1)
    x = jnp.transpose(x, (0, 2, 3, 1)).astype(jnp.bfloat16)  # NCHW -> NHWC, bf16

    x = basic_conv(params["Conv2d_1a_3x3"], x)
    x = basic_conv(params["Conv2d_2a_3x3"], x)
    x = basic_conv(params["Conv2d_2b_3x3"], x)
    x = max_pool(x, 3, 2)
    x = basic_conv(params["Conv2d_3b_1x1"], x)
    x = basic_conv(params["Conv2d_4a_3x3"], x)
    x = max_pool(x, 3, 2)
    x = inception_a_fwd(params["Mixed_5b"], x)
    x = inception_a_fwd(params["Mixed_5c"], x)
    x = inception_a_fwd(params["Mixed_5d"], x)
    x = inception_b_fwd(params["Mixed_6a"], x)
    x = inception_c_fwd(params["Mixed_6b"], x)
    x = inception_c_fwd(params["Mixed_6c"], x)
    x = inception_c_fwd(params["Mixed_6d"], x)
    x = inception_c_fwd(params["Mixed_6e"], x)
    # (AuxLogits branch skipped: eval mode)
    x = inception_d_fwd(params["Mixed_7a"], x)
    x = inception_e_fwd(params["Mixed_7b"], x)
    x = inception_e_fwd(params["Mixed_7c"], x)

    n = x.shape[0]
    feat = jnp.mean(x.astype(jnp.float32), axis=(1, 2))   # adaptive avg pool 1x1
    # dropout == identity in eval mode
    feat = feat.reshape(n, 1, 1, feat.shape[-1])
    logits = basic_conv(params["fc"], feat, relu=False, out_dtype=jnp.float32)
    return logits.reshape(n, -1)


if __name__ == "__main__":
    key = jax.random.PRNGKey(0)
    pkey, xkey = jax.random.split(key)
    params = build_params(pkey, CLASSNUM)
    # NCHW input; 75x75 is the minimum spatial size accepted by inception_v3.
    x = jax.random.normal(xkey, (2, 3, 75, 75), jnp.float32)
    logits = googlenet_forward(params, x)
    logits = jax.block_until_ready(logits)
    assert logits.shape == (2, CLASSNUM), logits.shape
    assert bool(jnp.all(jnp.isfinite(logits)))
    print("KERNEL_OK")
</pallas_src>

<mosaic_0001>
module attributes {stable_mosaic.version = 11 : i64} {
  func.func @_mm_kernel(%arg0: i32, %arg1: i32, %arg2: memref<128x128xbf16, #tpu.memory_space<vmem>>, %arg3: memref<128x128xbf16, #tpu.memory_space<vmem>>, %arg4: memref<1x128xf32, #tpu.memory_space<vmem>>, %arg5: memref<1x128xf32, #tpu.memory_space<vmem>>, %arg6: memref<128x128xbf16, #tpu.memory_space<vmem>>) attributes {dimension_semantics = [#tpu.dimension_semantics<parallel>, #tpu.dimension_semantics<parallel>], iteration_bounds = array<i64: 22, 1>, scalar_prefetch = 0 : i64, scratch_operands = 0 : i64, tpu.core_type = #tpu.core_type<tc>, window_params = [{transform_indices = @transform_0, window_bounds = array<i64: 128, 128>}, {transform_indices = @transform_1, window_bounds = array<i64: 128, 128>}, {transform_indices = @transform_2, window_bounds = array<i64: 1, 128>}, {transform_indices = @transform_3, window_bounds = array<i64: 1, 128>}, {transform_indices = @transform_4, window_bounds = array<i64: 128, 128>}]} {
    %c0 = arith.constant 0 : index
    %c0_0 = arith.constant 0 : index
    %0 = vector.load %arg2[%c0, %c0_0] : memref<128x128xbf16, #tpu.memory_space<vmem>>, vector<128x128xbf16>
    %c0_1 = arith.constant 0 : index
    %c0_2 = arith.constant 0 : index
    %1 = vector.load %arg3[%c0_1, %c0_2] : memref<128x128xbf16, #tpu.memory_space<vmem>>, vector<128x128xbf16>
    %cst = arith.constant dense<0.000000e+00> : vector<128x128xf32>
    %2 = tpu.matmul %0, %1, %cst {dimension_numbers = #tpu.dot_dimension_numbers<[1], [0], [0], [1], [0, 0, 1, 1], [], []>} : vector<128x128xbf16>, vector<128x128xbf16>, vector<128x128xf32> -> vector<128x128xf32>
    %c0_3 = arith.constant 0 : index
    %c0_4 = arith.constant 0 : index
    %3 = vector.load %arg4[%c0_3, %c0_4] : memref<1x128xf32, #tpu.memory_space<vmem>>, vector<1x128xf32>
    %4 = vector.broadcast %3 : vector<1x128xf32> to vector<128x128xf32>
    %5 = arith.mulf %2, %4 : vector<128x128xf32>
    %c0_5 = arith.constant 0 : index
    %c0_6 = arith.constant 0 : index
    %6 = vector.load %arg5[%c0_5, %c0_6] : memref<1x128xf32, #tpu.memory_space<vmem>>, vector<1x128xf32>
    %7 = vector.broadcast %6 : vector<1x128xf32> to vector<128x128xf32>
    %8 = arith.addf %5, %7 : vector<128x128xf32>
    %cst_7 = arith.constant 0.000000e+00 : f32
    %9 = vector.broadcast %cst_7 : f32 to vector<128x128xf32>
    %10 = arith.maximumf %8, %9 : vector<128x128xf32>
    %11 = arith.truncf %10 : vector<128x128xf32> to vector<128x128xbf16>
    %c0_8 = arith.constant 0 : index
    %c0_9 = arith.constant 0 : index
    %12 = vector.load %arg6[%c0_8, %c0_9] : memref<128x128xbf16, #tpu.memory_space<vmem>>, vector<128x128xbf16>
    tpu.vector_store %arg6[%c0_8, %c0_9], %11 {strides = array<i32>} : memref<128x128xbf16, #tpu.memory_space<vmem>>, vector<128x128xbf16>,
    return
  }
  func.func @transform_0(%arg0: i32, %arg1: i32) -> (i32, i32) {
    %c0_i32 = arith.constant 0 : i32
    %c0_i32_0 = arith.constant 0 : i32
    return %arg0, %c0_i32 : i32, i32
  }
  func.func @transform_1(%arg0: i32, %arg1: i32) -> (i32, i32) {
    %c0_i32 = arith.constant 0 : i32
    %c0_i32_0 = arith.constant 0 : i32
    return %c0_i32, %arg1 : i32, i32
  }
  func.func @transform_2(%arg0: i32, %arg1: i32) -> (i32, i32) {
    %c0_i32 = arith.constant 0 : i32
    %c0_i32_0 = arith.constant 0 : i32
    return %c0_i32, %arg1 : i32, i32
  }
  func.func @transform_3(%arg0: i32, %arg1: i32) -> (i32, i32) {
    %c0_i32 = arith.constant 0 : i32
    %c0_i32_0 = arith.constant 0 : i32
    return %c0_i32, %arg1 : i32, i32
  }
  func.func @transform_4(%arg0: i32, %arg1: i32) -> (i32, i32) {
    %c0_i32 = arith.constant 0 : i32
    return %arg0, %arg1 : i32, i32
  }
}

</mosaic_0001>

<bundles_post_ra>
// kernel: _conv_bn_act.1
= control target key start
LH: loop header
LB: loop body
LE: loop exit
PB: predicated region body
PF: predicated region fallthrough
CT: control target
= control target key end

     0   :  { %s1012_s15 = smov 0   ;;  %s1014_s16 = smov 0   ;;  %s1120_s0 = inlined_call_operand.vmem [shape: bf16[2816,128], index: 0, kind: input, shape index: {}]   ;;  %s1121_s1 = inlined_call_operand.vmem [shape: bf16[128,128], index: 1, kind: input, shape index: {}]   ;;  %s1122_s2 = inlined_call_operand.vmem [shape: f32[1,128], index: 2, kind: input, shape index: {}]   ;;  %s1123_s3 = inlined_call_operand.vmem [shape: f32[1,128], index: 3, kind: input, shape index: {}]   ;;  %s1124_s4 = inlined_call_operand.vmem [shape: bf16[2816,128], index: 4, kind: output, shape index: {}]  }
   0x1   :  { %s1016_s17 = smov 0  }
   0x2 LB: > { %s26_s18 = sadd.s32 1, %s981_s16  ;;  %p755_p0 = scmp.ge.s32.totalorder %s985_s17, 1  ;;  %s985_s17 = sphi %s1016_s17, %s14_s17   ;;  %s981_s16 = sphi %s1014_s16, %s1126_s16   ;;  %s977_s15 = sphi %s1012_s15, %s1125_s15  }
   0x3   : > { %p28_p1 = scmp.ge.s32.totalorder %s26_s18, 22  ;;  %p202_p2 = scmp.lt.s32.totalorder %s985_s17, 23 }
   0x5   : > { %s1128_s18 = smov (%p28_p1, %s26_s18), 0  ;;  %p203_p3 = pnand %p755_p0, %p202_p2 }
   0x6   : > { %v947_v0 = vld [vmem:[%s1121_s1] sm:$0xff] (!%p203_p3)   ;;  %s756_s21 = sshll.u32 (!%p203_p3), %s977_s15, 4  ;;  %v948_v1 = vld [vmem:[%s1121_s1 + $0x8] sm:$0xff] (!%p203_p3)   ;;  %v949_v2 = vld [vmem:[%s1121_s1 + $0x10] sm:$0xff] (!%p203_p3)  }
   0x7   : > { %206 = sbr.rel (%p203_p3) target bundleno = 272 (0x110), region = 36  ;;  %p242_p4 = scmp.lt.s32.totalorder (!%p203_p3), %s756_s21, 351  ;;  %875 = vmatprep.subr.bf16.mxu0 (!%p203_p3), %v947_v0  ;;  %907 = vmatprep.subr.bf16.mxu1 (!%p203_p3), %v947_v0  ;;  %v950_v3 = vld [vmem:[%s1121_s1 + $0x18] sm:$0xff] (!%p203_p3)   ;;  %v951_v6 = vld [vmem:[%s1121_s1 + $0x20] sm:$0xff] (!%p203_p3)   ;;  %v952_v7 = vld [vmem:[%s1121_s1 + $0x28] sm:$0xff] (!%p203_p3)  }
   0x8   : > { %876 = vmatpush3.bf16.msra.mxu0 (!%p203_p3), %v947_v0  ;;  %915 = vmatpush3.bf16.msra.mxu1 (!%p203_p3), %v947_v0  ;;  %v953_v8 = vld [vmem:[%s1121_s1 + $0x30] sm:$0xff] (!%p203_p3)   ;;  %v954_v9 = vld [vmem:[%s1121_s1 + $0x38] sm:$0xff] (!%p203_p3)   ;;  %v776_v16 = vld [vmem:[%s1122_s2] ss:$0 sm:$0xff] (!%p203_p3) }
   0x9   : > { %877 = vmatprep.subr.bf16.mxu0 (!%p203_p3), %v948_v1  ;;  %908 = vmatprep.subr.bf16.mxu1 (!%p203_p3), %v948_v1  ;;  %v1078_v18 = vld [vmem:[%s1123_s3] ss:$0 sm:$0xff] (!%p203_p3) }
   0xc   : > { %878 = vmatpush3.bf16.msra.mxu0 (!%p203_p3), %v948_v1  ;;  %916 = vmatpush3.bf16.msra.mxu1 (!%p203_p3), %v948_v1 }
   0xd   : > { %879 = vmatprep.subr.bf16.mxu0 (!%p203_p3), %v949_v2  ;;  %909 = vmatprep.subr.bf16.mxu1 (!%p203_p3), %v949_v2 }
   0xe   : > { %s1130_s21 = smov (!%p242_p4, %s756_s21), 351 }
   0xf   : > { %s757_s26 = sshll.u32 %s1130_s21, 2 }
  0x10   : > { %s1047_s29 = scalar_lea.vmem %s1120_s0, %s757_s26  ;;  %880 = vmatpush3.bf16.msra.mxu0 %v949_v2  ;;  %917 = vmatpush3.bf16.msra.mxu1 %v949_v2  ;;  %s1093_s24 = scalar_lea.vmem %s1124_s4, %s757_s26 }
  0x11   : > { %v955_v4 = vld [vmem:[%s1047_s29] sm:$0xff]   ;;  %881 = vmatprep.subr.bf16.mxu0 %v950_v3  ;;  %910 = vmatprep.subr.bf16.mxu1 %v950_v3  ;;  %v957_v10 = vld [vmem:[%s1047_s29 + $0x8] sm:$0xff]   ;;  %v959_v12 = vld [vmem:[%s1047_s29 + $0x10] sm:$0xff]  }
  0x12   : > { %v956_v5 = vld [vmem:[%s1047_s29 + $0x20] sm:$0xff]   ;;  %891 = vmatprep.mubr.bf16.mxu0 %v955_v4  ;;  %v958_v11 = vld [vmem:[%s1047_s29 + $0x28] sm:$0xff]   ;;  %v960_v13 = vld [vmem:[%s1047_s29 + $0x30] sm:$0xff]  }
  0x13   : > { %899 = vmatprep.mubr.bf16.mxu1 %v956_v5  ;;  %v961_v14 = vld [vmem:[%s1047_s29 + $0x18] sm:$0xff]  }
  0x14   : > { %882 = vmatpush3.bf16.msra.mxu0 %v950_v3  ;;  %918 = vmatpush3.bf16.msra.mxu1 %v950_v3  ;;  %v962_v15 = vld [vmem:[%s1047_s29 + $0x38] sm:$0xff]  }
  0x15   : > { %883 = vmatprep.subr.bf16.mxu0 %v951_v6  ;;  %911 = vmatprep.subr.bf16.mxu1 %v951_v6 }
  0x18   : > { %884 = vmatpush3.bf16.msra.mxu0 %v951_v6  ;;  %919 = vmatpush3.bf16.msra.mxu1 %v951_v6 }
  0x19   : > { %885 = vmatprep.subr.bf16.mxu0 %v952_v7  ;;  %912 = vmatprep.subr.bf16.mxu1 %v952_v7 }
  0x1c   : > { %886 = vmatpush3.bf16.msra.mxu0 %v952_v7  ;;  %920 = vmatpush3.bf16.msra.mxu1 %v952_v7 }
  0x1d   : > { %887 = vmatprep.subr.bf16.mxu0 %v953_v8  ;;  %913 = vmatprep.subr.bf16.mxu1 %v953_v8 }
  0x20   : > { %888 = vmatpush3.bf16.msra.mxu0 %v953_v8  ;;  %921 = vmatpush3.bf16.msra.mxu1 %v953_v8 }
  0x21   : > { %889 = vmatprep.subr.bf16.mxu0 %v954_v9  ;;  %914 = vmatprep.subr.bf16.mxu1 %v954_v9 }
  0x24   : > { %890 = vmatpush3.bf16.msra.mxu0 %v954_v9  ;;  %922 = vmatpush3.bf16.msra.mxu1 %v954_v9 }
  0x27   : > { %892 = vmatmul.mubr.bf16.vlgmr.msra.gmra.mrb[0].mxu0 %v957_v10  ;;  %900 = vmatmul.mubr.bf16.vlgmr.msra.gmra.mrb[0].mxu1 %v958_v11 }
  0x28   : > { %895 = vmatprep.mubr.bf16.mxu0 %v959_v12  ;;  %903 = vmatprep.mubr.bf16.mxu1 %v960_v13 }
  0x2f   : > { %896 = vmatmul.mubr.bf16.gmra.mrb[4].mxu0 %v961_v14  ;;  %904 = vmatmul.mubr.bf16.gmra.mrb[4].mxu1 %v962_v15 }
  0xfa   : > { %v893_v17 = vpop.f32.mrb[0].mxu0  ;;  %v901_v19 = vpop.f32.mrb[0].mxu1 }
  0xfb   : > { %v501_v20 = vmul.f32 %v893_v17, %v776_v16  ;;  %v509_v21 = vmul.f32 %v901_v19, %v776_v16  ;;  %v429_v22 = vpop.f32.mrb[1].mxu0  ;;  %v461_v23 = vpop.f32.mrb[1].mxu1 }
  0xfc   : > { %v499_v24 = vmul.f32 %v776_v16, %v429_v22  ;;  %v507_v25 = vmul.f32 %v776_v16, %v461_v23  ;;  %v894_v26 = vpop.f32.mrb[2].mxu0  ;;  %v902_v27 = vpop.f32.mrb[2].mxu1 }
  0xfd   : > { %v524_v28 = vadd.f32 %v1078_v18, %v501_v20  ;;  %v532_v29 = vadd.f32 %v1078_v18, %v509_v21  ;;  %v502_v30 = vmul.f32 %v894_v26, %v776_v16  ;;  %v510_v31 = vmul.f32 %v902_v27, %v776_v16  ;;  %v432_v32 = vpop.f32.mrb[3].mxu0  ;;  %v464_v33 = vpop.f32.mrb[3].mxu1 }
  0xfe   : > { %v522_v34 = vadd.f32 %v1078_v18, %v499_v24  ;;  %v530_v35 = vadd.f32 %v1078_v18, %v507_v25  ;;  %v500_v36 = vmul.f32 %v776_v16, %v432_v32  ;;  %v508_v37 = vmul.f32 %v776_v16, %v464_v33 }
  0xff   : > { %v525_v38 = vadd.f32 %v1078_v18, %v502_v30  ;;  %v533_v39 = vadd.f32 %v1078_v18, %v510_v31  ;;  %v540_v42 = vmax.f32 %v524_v28, 0.0  ;;  %v548_v43 = vmax.f32 %v532_v29, 0.0 }
 0x100   : > { %v523_v40 = vadd.f32 %v1078_v18, %v500_v36  ;;  %v531_v41 = vadd.f32 %v1078_v18, %v508_v37  ;;  %v538_v46 = vmax.f32 %v522_v34, 0.0  ;;  %v546_v47 = vmax.f32 %v530_v35, 0.0 }
 0x101   : > { %v541_v44 = vmax.f32 %v525_v38, 0.0  ;;  %v549_v45 = vmax.f32 %v533_v39, 0.0 }
 0x102   : > { %v539_v48 = vmax.f32 %v523_v40, 0.0  ;;  %v547_v49 = vmax.f32 %v531_v41, 0.0  ;;  %v897_v50 = vpop.f32.mrb[4].mxu0  ;;  %v905_v51 = vpop.f32.mrb[4].mxu1 }
 0x103   : > { %v820_v52 = vpack.c.bf16 %v541_v44, %v540_v42  ;;  %v840_v53 = vpack.c.bf16 %v549_v45, %v548_v43  ;;  %v505_v54 = vmul.f32 %v897_v50, %v776_v16  ;;  %v513_v55 = vmul.f32 %v905_v51, %v776_v16  ;;  %v445_v56 = vpop.f32.mrb[5].mxu0  ;;  %v477_v57 = vpop.f32.mrb[5].mxu1 }
 0x104   : > { %v815_v58 = vpack.c.bf16 %v539_v48, %v538_v46  ;;  %v835_v59 = vpack.c.bf16 %v547_v49, %v546_v47  ;;  %v503_v60 = vmul.f32 %v776_v16, %v445_v56  ;;  %v511_v61 = vmul.f32 %v776_v16, %v477_v57  ;;  %v898_v62 = vpop.f32.mrb[6].mxu0  ;;  %v906_v63 = vpop.f32.mrb[6].mxu1 }
 0x105   : > { %852 = vst [vmem:[%s1093_s24 + $0x8] sm:$0xff] %v820_v52   ;;  %856 = vst [vmem:[%s1093_s24 + $0x28] sm:$0xff] %v840_v53   ;;  %v528_v0 = vadd.f32 %v1078_v18, %v505_v54  ;;  %v536_v1 = vadd.f32 %v1078_v18, %v513_v55  ;;  %v506_v2 = vmul.f32 %v898_v62, %v776_v16  ;;  %v448_v4 = vpop.f32.mrb[7].mxu0  ;;  %v480_v5 = vpop.f32.mrb[7].mxu1 }
 0x106   : > { %v514_v3 = vmul.f32 %v906_v63, %v776_v16  ;;  %816 = vst [vmem:[%s1093_s24] sm:$0xff] %v815_v58   ;;  %855 = vst [vmem:[%s1093_s24 + $0x20] sm:$0xff] %v835_v59   ;;  %v526_v6 = vadd.f32 %v1078_v18, %v503_v60  ;;  %v534_v7 = vadd.f32 %v1078_v18, %v511_v61 }
 0x107   : > { %v504_v8 = vmul.f32 %v776_v16, %v448_v4  ;;  %v512_v9 = vmul.f32 %v776_v16, %v480_v5  ;;  %v529_v10 = vadd.f32 %v1078_v18, %v506_v2  ;;  %v544_v14 = vmax.f32 %v528_v0, 0.0 }
 0x108   : > { %v537_v11 = vadd.f32 %v1078_v18, %v514_v3  ;;  %v552_v15 = vmax.f32 %v536_v1, 0.0  ;;  %v542_v20 = vmax.f32 %v526_v6, 0.0  ;;  %v550_v21 = vmax.f32 %v534_v7, 0.0 }
 0x109   : > { %v527_v12 = vadd.f32 %v1078_v18, %v504_v8  ;;  %v535_v13 = vadd.f32 %v1078_v18, %v512_v9  ;;  %v545_v17 = vmax.f32 %v529_v10, 0.0 }
 0x10a   : > { %v553_v19 = vmax.f32 %v537_v11, 0.0 }
 0x10b   : > { %v543_v22 = vmax.f32 %v527_v12, 0.0  ;;  %v551_v16 = vmax.f32 %v535_v13, 0.0  ;;  %v830_v23 = vpack.c.bf16 %v545_v17, %v544_v14 }
 0x10c   : > { %v850_v24 = vpack.c.bf16 %v553_v19, %v552_v15 }
 0x10d   : > { %v825_v25 = vpack.c.bf16 %v543_v22, %v542_v20  ;;  %v845_v26 = vpack.c.bf16 %v551_v16, %v550_v21  ;;  %854 = vst [vmem:[%s1093_s24 + $0x18] sm:$0xff] %v830_v23  }
 0x10e   : > { %858 = vst [vmem:[%s1093_s24 + $0x38] sm:$0xff] %v850_v24  }
 0x10f   : > { %853 = vst [vmem:[%s1093_s24 + $0x10] sm:$0xff] %v825_v25   ;;  %857 = vst [vmem:[%s1093_s24 + $0x30] sm:$0xff] %v845_v26  }
 0x110 PF: > { %s14_s17 = sadd.s32 1, %s985_s17   ;;  %s1125_s15 = smov %s981_s16 }
 0x111   : > { %p11_p5 = scmp.ge.s32.totalorder %s14_s17, 24   ;;  %s1126_s16 = smov %s1128_s18 }
 0x113   :  { %13 = sbr.rel (!%p11_p5) target bundleno = 2 (0x2), region = 75 }

</bundles_post_ra>
